<compile_context>
chip_gen: v6e
topology: v6e:2x2x1
jax: 0.10.0
libtpu: 0.0.40
codegen_flags: <defaults>
</compile_context>

<pallas_src>
import jax
import jax.numpy as jnp
from jax import lax
from jax.experimental import pallas as pl
from jax.experimental.pallas import tpu as pltpu

INPUT_SIZE = 784
HIDDEN_SIZE = 500
NUM_CLASSES = 10


def mlp_kernel(x_ref, w1_ref, b1_ref, w2_ref, b2_ref, o_ref):
    # fc1: [TB, IN] x [H, IN] (contract IN with IN) -> [TB, H], f32 accumulate.
    x_bf = x_ref[...].astype(jnp.bfloat16)
    h = lax.dot_general(
        x_bf, w1_ref[...],
        dimension_numbers=(((1,), (1,)), ((), ())),
        preferred_element_type=jnp.float32,
    )
    h = jnp.maximum(h + b1_ref[...], 0.0)          # bias + ReLU in f32

    # fc2: [TB, H] x [C, H] (contract H with H) -> [TB, C], f32 accumulate.
    out = lax.dot_general(
        h.astype(jnp.bfloat16), w2_ref[...],
        dimension_numbers=(((1,), (1,)), ((), ())),
        preferred_element_type=jnp.float32,
    )
    o_ref[...] = (out + b2_ref[...]).astype(o_ref.dtype)


def prepare_params(w1, b1, w2, b2):
    """One-time parameter prep (outside the hot path): bf16 weights, 2-D biases.

    w1: [HIDDEN, INPUT] f32, b1: [HIDDEN], w2: [CLASSES, HIDDEN], b2: [CLASSES].
    """
    return (
        w1.astype(jnp.bfloat16),         # [H, IN]  (PyTorch layout, no transpose)
        b1.reshape(1, -1),               # [1, H]   f32
        w2.astype(jnp.bfloat16),         # [C, H]
        b2.reshape(1, -1),               # [1, C]   f32
    )


def neural_net_forward(x, w1_bf, b1_2d, w2_bf, b2_2d, *, max_batch_tile=256):
    """x: [B, 784] f32. Weights already prepared via prepare_params."""
    B = x.shape[0]
    # Single full-extent tile for small B (no per-step overhead on v5e);
    # 256-row tiles for large B (8-aligned, pipelined, megacore-shardable).
    tb = B if B <= max_batch_tile else max_batch_tile
    grid = (pl.cdiv(B, tb),)

    x_spec = pl.BlockSpec((tb, INPUT_SIZE), lambda i: (i, 0))
    o_spec = pl.BlockSpec((tb, NUM_CLASSES), lambda i: (i, 0))
    # Weights / biases: full-extent blocks, constant block index -> VMEM-resident.
    w1_spec = pl.BlockSpec((HIDDEN_SIZE, INPUT_SIZE), lambda i: (0, 0))
    b1_spec = pl.BlockSpec((1, HIDDEN_SIZE), lambda i: (0, 0))
    w2_spec = pl.BlockSpec((NUM_CLASSES, HIDDEN_SIZE), lambda i: (0, 0))
    b2_spec = pl.BlockSpec((1, NUM_CLASSES), lambda i: (0, 0))

    return pl.pallas_call(
        mlp_kernel,
        out_shape=jax.ShapeDtypeStruct((B, NUM_CLASSES), jnp.float32),
        grid=grid,
        in_specs=[x_spec, w1_spec, b1_spec, w2_spec, b2_spec],
        out_specs=o_spec,
        compiler_params=pltpu.CompilerParams(
            dimension_semantics=("parallel",),
        ),
    )(x, w1_bf, b1_2d, w2_bf, b2_2d)


def reference_forward_f32(x, w1, b1, w2, b2):
    h = jnp.maximum(x @ w1.T + b1, 0.0)
    return h @ w2.T + b2


def reference_forward_bf16(x, w1, b1, w2, b2):
    """Same bf16-matmul / f32-accumulate recipe as the kernel."""
    h = jnp.dot(x.astype(jnp.bfloat16), w1.T.astype(jnp.bfloat16),
                preferred_element_type=jnp.float32) + b1
    h = jnp.maximum(h, 0.0)
    out = jnp.dot(h.astype(jnp.bfloat16), w2.T.astype(jnp.bfloat16),
                  preferred_element_type=jnp.float32) + b2
    return out


if __name__ == "__main__":
    key = jax.random.PRNGKey(0)
    k_x, k_w1, k_b1, k_w2, k_b2 = jax.random.split(key, 5)

    B = 8
    x = jax.random.normal(k_x, (B, INPUT_SIZE), dtype=jnp.float32)

    # Deterministic parameter init (PyTorch nn.Linear shapes: [out, in]).
    lim1 = 1.0 / (INPUT_SIZE ** 0.5)
    w1 = jax.random.uniform(k_w1, (HIDDEN_SIZE, INPUT_SIZE),
                            minval=-lim1, maxval=lim1, dtype=jnp.float32)
    b1 = jax.random.uniform(k_b1, (HIDDEN_SIZE,),
                            minval=-lim1, maxval=lim1, dtype=jnp.float32)
    lim2 = 1.0 / (HIDDEN_SIZE ** 0.5)
    w2 = jax.random.uniform(k_w2, (NUM_CLASSES, HIDDEN_SIZE),
                            minval=-lim2, maxval=lim2, dtype=jnp.float32)
    b2 = jax.random.uniform(k_b2, (NUM_CLASSES,),
                            minval=-lim2, maxval=lim2, dtype=jnp.float32)

    # One-time prep (bf16 cast + bias reshape) outside the forward path.
    w1_bf, b1_2d, w2_bf, b2_2d = prepare_params(w1, b1, w2, b2)

    out = neural_net_forward(x, w1_bf, b1_2d, w2_bf, b2_2d)
    out = jax.block_until_ready(out)
    assert out.shape == (B, NUM_CLASSES)

    # Tight check vs. a reference using the same bf16-matmul recipe.
    ref_bf = reference_forward_bf16(x, w1, b1, w2, b2)
    assert jnp.allclose(out, ref_bf, atol=1e-3, rtol=1e-3), "mismatch vs bf16 reference"

    # Loose sanity check vs. the full-f32 reference (bf16 quantization noise).
    ref_f32 = reference_forward_f32(x, w1, b1, w2, b2)
    assert jnp.allclose(out, ref_f32, atol=5e-2, rtol=5e-2), "mismatch vs f32 reference"

    print("KERNEL_OK")
</pallas_src>

<mosaic_0001>
module attributes {stable_mosaic.version = 11 : i64} {
  func.func @mlp_kernel(%arg0: i32, %arg1: memref<8x784xf32, #tpu.memory_space<vmem>>, %arg2: memref<500x784xbf16, #tpu.memory_space<vmem>>, %arg3: memref<1x500xf32, #tpu.memory_space<vmem>>, %arg4: memref<10x500xbf16, #tpu.memory_space<vmem>>, %arg5: memref<1x10xf32, #tpu.memory_space<vmem>>, %arg6: memref<8x10xf32, #tpu.memory_space<vmem>>) attributes {dimension_semantics = [#tpu.dimension_semantics<parallel>], iteration_bounds = array<i64: 1>, scalar_prefetch = 0 : i64, scratch_operands = 0 : i64, tpu.core_type = #tpu.core_type<tc>, window_params = [{transform_indices = @transform_0, window_bounds = array<i64: 8, 784>}, {pipeline_mode = #tpu.pipeline_mode<synchronous>, transform_indices = @transform_1, window_bounds = array<i64: 500, 784>}, {pipeline_mode = #tpu.pipeline_mode<synchronous>, transform_indices = @transform_2, window_bounds = array<i64: 1, 500>}, {pipeline_mode = #tpu.pipeline_mode<synchronous>, transform_indices = @transform_3, window_bounds = array<i64: 10, 500>}, {pipeline_mode = #tpu.pipeline_mode<synchronous>, transform_indices = @transform_4, window_bounds = array<i64: 1, 10>}, {transform_indices = @transform_5, window_bounds = array<i64: 8, 10>}]} {
    %c0 = arith.constant 0 : index
    %c0_0 = arith.constant 0 : index
    %0 = vector.load %arg1[%c0, %c0_0] : memref<8x784xf32, #tpu.memory_space<vmem>>, vector<8x784xf32>
    %1 = arith.truncf %0 : vector<8x784xf32> to vector<8x784xbf16>
    %c0_1 = arith.constant 0 : index
    %c0_2 = arith.constant 0 : index
    %2 = vector.load %arg2[%c0_1, %c0_2] : memref<500x784xbf16, #tpu.memory_space<vmem>>, vector<500x784xbf16>
    %cst = arith.constant dense<0.000000e+00> : vector<8x500xf32>
    %3 = tpu.matmul %1, %2, %cst {dimension_numbers = #tpu.dot_dimension_numbers<[1], [1], [0], [0], [0, 0, 1, 0], [], []>} : vector<8x784xbf16>, vector<500x784xbf16>, vector<8x500xf32> -> vector<8x500xf32>
    %c0_3 = arith.constant 0 : index
    %c0_4 = arith.constant 0 : index
    %4 = vector.load %arg3[%c0_3, %c0_4] : memref<1x500xf32, #tpu.memory_space<vmem>>, vector<1x500xf32>
    %5 = vector.broadcast %4 : vector<1x500xf32> to vector<8x500xf32>
    %6 = arith.addf %3, %5 : vector<8x500xf32>
    %cst_5 = arith.constant 0.000000e+00 : f32
    %7 = vector.broadcast %cst_5 : f32 to vector<8x500xf32>
    %8 = arith.maximumf %6, %7 : vector<8x500xf32>
    %9 = arith.truncf %8 : vector<8x500xf32> to vector<8x500xbf16>
    %c0_6 = arith.constant 0 : index
    %c0_7 = arith.constant 0 : index
    %10 = vector.load %arg4[%c0_6, %c0_7] : memref<10x500xbf16, #tpu.memory_space<vmem>>, vector<10x500xbf16>
    %cst_8 = arith.constant dense<0.000000e+00> : vector<8x10xf32>
    %11 = tpu.matmul %9, %10, %cst_8 {dimension_numbers = #tpu.dot_dimension_numbers<[1], [1], [0], [0], [0, 0, 1, 0], [], []>} : vector<8x500xbf16>, vector<10x500xbf16>, vector<8x10xf32> -> vector<8x10xf32>
    %c0_9 = arith.constant 0 : index
    %c0_10 = arith.constant 0 : index
    %12 = vector.load %arg5[%c0_9, %c0_10] : memref<1x10xf32, #tpu.memory_space<vmem>>, vector<1x10xf32>
    %13 = vector.broadcast %12 : vector<1x10xf32> to vector<8x10xf32>
    %14 = arith.addf %11, %13 : vector<8x10xf32>
    %c0_11 = arith.constant 0 : index
    %c0_12 = arith.constant 0 : index
    %15 = vector.load %arg6[%c0_11, %c0_12] : memref<8x10xf32, #tpu.memory_space<vmem>>, vector<8x10xf32>
    tpu.vector_store %arg6[%c0_11, %c0_12], %14 {strides = array<i32>} : memref<8x10xf32, #tpu.memory_space<vmem>>, vector<8x10xf32>,
    return
  }
  func.func @transform_0(%arg0: i32) -> (i32, i32) {
    %c0_i32 = arith.constant 0 : i32
    %c0_i32_0 = arith.constant 0 : i32
    return %arg0, %c0_i32 : i32, i32
  }
  func.func @transform_1(%arg0: i32) -> (i32, i32) {
    %c0_i32 = arith.constant 0 : i32
    %c0_i32_0 = arith.constant 0 : i32
    %c0_i32_1 = arith.constant 0 : i32
    return %c0_i32, %c0_i32_0 : i32, i32
  }
  func.func @transform_2(%arg0: i32) -> (i32, i32) {
    %c0_i32 = arith.constant 0 : i32
    %c0_i32_0 = arith.constant 0 : i32
    %c0_i32_1 = arith.constant 0 : i32
    return %c0_i32, %c0_i32_0 : i32, i32
  }
  func.func @transform_3(%arg0: i32) -> (i32, i32) {
    %c0_i32 = arith.constant 0 : i32
    %c0_i32_0 = arith.constant 0 : i32
    %c0_i32_1 = arith.constant 0 : i32
    return %c0_i32, %c0_i32_0 : i32, i32
  }
  func.func @transform_4(%arg0: i32) -> (i32, i32) {
    %c0_i32 = arith.constant 0 : i32
    %c0_i32_0 = arith.constant 0 : i32
    %c0_i32_1 = arith.constant 0 : i32
    return %c0_i32, %c0_i32_0 : i32, i32
  }
  func.func @transform_5(%arg0: i32) -> (i32, i32) {
    %c0_i32 = arith.constant 0 : i32
    %c0_i32_0 = arith.constant 0 : i32
    return %arg0, %c0_i32 : i32, i32
  }
}

</mosaic_0001>

<bundles_post_ra>
// kernel: tpu_custom_call.1
= control target key start
LH: loop header
LB: loop body
LE: loop exit
PB: predicated region body
PF: predicated region fallthrough
CT: control target
= control target key end

     0   :  { %vm1419_vm0 = vcmask 130048   ;;  %s3447_s0 = inlined_call_operand.vmem [shape: f32[8,784], index: 0, kind: input, shape index: {}]   ;;  %s3448_s1 = inlined_call_operand.vmem [shape: bf16[500,784], index: 1, kind: input, shape index: {}]   ;;  %s3449_s2 = inlined_call_operand.vmem [shape: f32[1,500], index: 2, kind: input, shape index: {}]   ;;  %s3450_s3 = inlined_call_operand.vmem [shape: bf16[10,500], index: 3, kind: input, shape index: {}]   ;;  %s3451_s4 = inlined_call_operand.vmem [shape: f32[1,10], index: 4, kind: input, shape index: {}]   ;;  %s3452_s5 = inlined_call_operand.hbm [shape: f32[8,10], index: 5, kind: output, shape index: {}]  }
   0x1   :  { %v2274_v0 = vld [vmem:[%s3448_s1 + $0x18c] ss:$28 sps:$4 sm:$0xff]   ;;  %v2276_v1 = vld [vmem:[%s3448_s1 + $0x194] ss:$28 sps:$4 sm:$0xff]   ;;  %v2282_v5 = vld [vmem:[%s3448_s1 + $0x15c] ss:$28 sps:$4 sm:$0xff]  }
   0x2   :  { %1519 = vmatprep.subr.bf16.mxu0 %v2274_v0  ;;  %v2278_v2 = vld [vmem:[%s3448_s1 + $0x188] ss:$28 sps:$4 sm:$0xff]   ;;  %v2279_v3 = vld [vmem:[%s3448_s1 + $0x190] ss:$28 sps:$4 sm:$0xff]   ;;  %1560 = vmatprep.subr.bf16.mxu1 %v2276_v1  ;;  %v2285_v7 = vld [vmem:[%s3448_s1 + $0x158] ss:$28 sps:$4 sm:$0xff]  }
   0x3   :  { %v2280_v4 = vld [vmem:[%s3448_s1 + $0x154] ss:$28 sps:$4 sm:$0xff]   ;;  %1520 = vmatpush1.bf16.xpose.msra.mxu0 %v2278_v2  ;;  %1561 = vmatpush1.bf16.xpose.msra.mxu1 %v2279_v3  ;;  %v2286_v8 = vld [vmem:[%s3448_s1 + $0x11c] ss:$28 sps:$4 sm:$0xff]   ;;  %v2288_v9 = vld [vmem:[%s3448_s1 + $0x124] ss:$28 sps:$4 sm:$0xff]  }
   0x4   :  { %1521 = vmatprep.subr.bf16.mxu0 %v2280_v4  ;;  %1562 = vmatprep.subr.bf16.mxu1 %v2282_v5  ;;  %v2284_v6 = vld [vmem:[%s3448_s1 + $0x150] ss:$28 sps:$4 sm:$0xff]   ;;  %v2290_v10 = vld [vmem:[%s3448_s1 + $0x118] ss:$28 sps:$4 sm:$0xff]   ;;  %v2291_v11 = vld [vmem:[%s3448_s1 + $0x120] ss:$28 sps:$4 sm:$0xff]  }
   0x5   :  { %v2292_v12 = vld [vmem:[%s3448_s1 + $0xe4] ss:$28 sps:$4 sm:$0xff]   ;;  %v2294_v13 = vld [vmem:[%s3448_s1 + $0xec] ss:$28 sps:$4 sm:$0xff]   ;;  %v2300_v17 = vld [vmem:[%s3448_s1 + $0xb4] ss:$28 sps:$4 sm:$0xff]  }
   0x6   :  { %v2296_v14 = vld [vmem:[%s3448_s1 + $0xe0] ss:$28 sps:$4 sm:$0xff]   ;;  %v2297_v15 = vld [vmem:[%s3448_s1 + $0xe8] ss:$28 sps:$4 sm:$0xff]   ;;  %v2303_v19 = vld [vmem:[%s3448_s1 + $0xb0] ss:$28 sps:$4 sm:$0xff]  }
   0x7   :  { %v2298_v16 = vld [vmem:[%s3448_s1 + $0xac] ss:$28 sps:$4 sm:$0xff]   ;;  %v2304_v20 = vld [vmem:[%s3448_s1 + $0x74] ss:$28 sps:$4 sm:$0xff]   ;;  %v2306_v21 = vld [vmem:[%s3448_s1 + $0x7c] ss:$28 sps:$4 sm:$0xff]  }
   0x8   :  { %v2302_v18 = vld [vmem:[%s3448_s1 + $0xa8] ss:$28 sps:$4 sm:$0xff]   ;;  %v2308_v22 = vld [vmem:[%s3448_s1 + $0x70] ss:$28 sps:$4 sm:$0xff]   ;;  %v2309_v23 = vld [vmem:[%s3448_s1 + $0x78] ss:$28 sps:$4 sm:$0xff]  }
   0x9   :  { %v2310_v24 = vld [vmem:[%s3448_s1 + $0x3c] ss:$28 sps:$4 sm:$0xff]   ;;  %v2312_v25 = vld [vmem:[%s3448_s1 + $0x44] ss:$28 sps:$4 sm:$0xff]   ;;  %v23_v26 = vld [vmem:[%s3447_s0 + $0x8] sm:$0xff] }
   0xa   :  { %v2731_v27 = vpack.c.bf16 %v23_v26, %v23_v26  ;;  %v25_v28 = vld [vmem:[%s3447_s0 + $0x18] sm:$0xff]  ;;  %v2316_v32 = vld [vmem:[%s3448_s1 + $0x4] ss:$28 sps:$4 sm:$0xff]   ;;  %v2318_v33 = vld [vmem:[%s3448_s1 + $0xc] ss:$28 sps:$4 sm:$0xff]  }
   0xb   :  { %1522 = vmatpush1.bf16.xpose.msra.mxu0 %v2284_v6  ;;  %1563 = vmatpush1.bf16.xpose.msra.mxu1 %v2285_v7  ;;  %v2736_v29 = vpack.c.bf16 %v25_v28, %v25_v28  ;;  %v2314_v30 = vld [vmem:[%s3448_s1 + $0x38] ss:$28 sps:$4 sm:$0xff]   ;;  %v2315_v31 = vld [vmem:[%s3448_s1 + $0x40] ss:$28 sps:$4 sm:$0xff]   ;;  %v2321_v35 = vld [vmem:[%s3448_s1 + $0x8] ss:$28 sps:$4 sm:$0xff]  }
   0xc   :  { %1523 = vmatprep.subr.bf16.mxu0 %v2286_v8  ;;  %1564 = vmatprep.subr.bf16.mxu1 %v2288_v9  ;;  %v2320_v34 = vld [vmem:[%s3448_s1] ss:$28 sps:$4 sm:$0xff]   ;;  %v2322_v36 = vld [vmem:[%s3448_s1 + $0x34c] ss:$28 sps:$4 sm:$0xff]   ;;  %v2324_v37 = vld [vmem:[%s3448_s1 + $0x354] ss:$28 sps:$4 sm:$0xff]  }
   0xd   :  { %1551 = vmatprep.mubr.bf16.mxu0 %v2731_v27  ;;  %1592 = vmatprep.mubr.bf16.mxu1 %v2736_v29  ;;  %v2326_v38 = vld [vmem:[%s3448_s1 + $0x348] ss:$28 sps:$4 sm:$0xff]   ;;  %v2327_v39 = vld [vmem:[%s3448_s1 + $0x350] ss:$28 sps:$4 sm:$0xff]   ;;  %v2330_v41 = vld [vmem:[%s3448_s1 + $0x31c] ss:$28 sps:$4 sm:$0xff]  }
   0xe   :  { %v2328_v40 = vld [vmem:[%s3448_s1 + $0x314] ss:$28 sps:$4 sm:$0xff]   ;;  %v2334_v44 = vld [vmem:[%s3448_s1 + $0x2dc] ss:$28 sps:$4 sm:$0xff]   ;;  %v2336_v45 = vld [vmem:[%s3448_s1 + $0x2e4] ss:$28 sps:$4 sm:$0xff]  }
   0xf   :  { %v2332_v42 = vld [vmem:[%s3448_s1 + $0x310] ss:$28 sps:$4 sm:$0xff]   ;;  %v2333_v43 = vld [vmem:[%s3448_s1 + $0x318] ss:$28 sps:$4 sm:$0xff]   ;;  %v2339_v47 = vld [vmem:[%s3448_s1 + $0x2e0] ss:$28 sps:$4 sm:$0xff]  }
  0x10   :  { %v2338_v46 = vld [vmem:[%s3448_s1 + $0x2d8] ss:$28 sps:$4 sm:$0xff]   ;;  %v2340_v48 = vld [vmem:[%s3448_s1 + $0x2a4] ss:$28 sps:$4 sm:$0xff]   ;;  %v2342_v49 = vld [vmem:[%s3448_s1 + $0x2ac] ss:$28 sps:$4 sm:$0xff]  }
  0x11   :  { %v2344_v50 = vld [vmem:[%s3448_s1 + $0x2a0] ss:$28 sps:$4 sm:$0xff]   ;;  %v2345_v51 = vld [vmem:[%s3448_s1 + $0x2a8] ss:$28 sps:$4 sm:$0xff]   ;;  %v2348_v53 = vld [vmem:[%s3448_s1 + $0x274] ss:$28 sps:$4 sm:$0xff]  }
  0x12   :  { %v2346_v52 = vld [vmem:[%s3448_s1 + $0x26c] ss:$28 sps:$4 sm:$0xff]   ;;  %v2352_v56 = vld [vmem:[%s3448_s1 + $0x234] ss:$28 sps:$4 sm:$0xff]   ;;  %v2354_v57 = vld [vmem:[%s3448_s1 + $0x23c] ss:$28 sps:$4 sm:$0xff]  }
  0x13   :  { %1524 = vmatpush1.bf16.xpose.msra.mxu0 %v2290_v10  ;;  %1565 = vmatpush1.bf16.xpose.msra.mxu1 %v2291_v11  ;;  %v2350_v54 = vld [vmem:[%s3448_s1 + $0x268] ss:$28 sps:$4 sm:$0xff]   ;;  %v2351_v55 = vld [vmem:[%s3448_s1 + $0x270] ss:$28 sps:$4 sm:$0xff]   ;;  %v2357_v59 = vld [vmem:[%s3448_s1 + $0x238] ss:$28 sps:$4 sm:$0xff]  }
  0x14   :  { %1525 = vmatprep.subr.bf16.mxu0 %v2292_v12  ;;  %1566 = vmatprep.subr.bf16.mxu1 %v2294_v13  ;;  %v2356_v58 = vld [vmem:[%s3448_s1 + $0x230] ss:$28 sps:$4 sm:$0xff]   ;;  %v2358_v60 = vld [vmem:[%s3448_s1 + $0x1fc] ss:$28 sps:$4 sm:$0xff]   ;;  %v2360_v61 = vld [vmem:[%s3448_s1 + $0x204] ss:$28 sps:$4 sm:$0xff]  }
  0x15   :  { %v2362_v62 = vld [vmem:[%s3448_s1 + $0x1f8] ss:$28 sps:$4 sm:$0xff]   ;;  %v2363_v63 = vld [vmem:[%s3448_s1 + $0x200] ss:$28 sps:$4 sm:$0xff]   ;;  %v2366_v1 = vld [vmem:[%s3448_s1 + $0x1cc] ss:$28 sps:$4 sm:$0xff]  }
  0x16   :  { %v2364_v0 = vld [vmem:[%s3448_s1 + $0x1c4] ss:$28 sps:$4 sm:$0xff]   ;;  %v2372_v4 = vld [vmem:[%s3448_s1 + $0x19c] ss:$28 sps:$4 sm:$0xff]   ;;  %v24_v7 = vld [vmem:[%s3447_s0 + $0x10] sm:$0xff] }
  0x17   :  { %v2368_v2 = vld [vmem:[%s3448_s1 + $0x1c0] ss:$28 sps:$4 sm:$0xff]   ;;  %v2369_v3 = vld [vmem:[%s3448_s1 + $0x1c8] ss:$28 sps:$4 sm:$0xff]   ;;  %v28_v9 = vld [vmem:[%s3447_s0 + $0x30] sm:$0xff]  ;;  %v2881_v13 = vpack.c.bf16 %v24_v7, %v24_v7 }
  0x18   :  { %v2373_v5 = vld [vmem:[%s3448_s1 + $0x360] ss:$28 sps:$4 sm:$0xff]   ;;  %v27_v10 = vld [vmem:[%s3447_s0 + $0x28] sm:$0xff]  ;;  %v2370_v11 = vld [vmem:[%s3448_s1 + $0x198] ss:$28 sps:$4 sm:$0xff]  }
  0x19   :  { %v22_v6 = vld [vmem:[%s3447_s0] sm:$0xff] }
  0x1a   :  { %v2374_v8 = vld [vmem:[%s3448_s1 + $0x1a0] ss:$28 sps:$4 sm:$0xff]   ;;  %v2879_v12 = vpack.c.bf16 %v22_v6, %v22_v6 }
  0x1b   :  { %1526 = vmatpush1.bf16.xpose.msra.mxu0 %v2296_v14  ;;  %1567 = vmatpush1.bf16.xpose.msra.mxu1 %v2297_v15  ;;  %v2377_v14 = vld [vmem:[%s3448_s1 + $0x164] ss:$28 sps:$4 sm:$0xff]   ;;  %v1445_v15 = vsel %vm1419_vm0, %v2374_v8, 0 }
  0x1c   :  { %1527 = vmatprep.subr.bf16.mxu0 %v2298_v16  ;;  %1568 = vmatprep.subr.bf16.mxu1 %v2300_v17  ;;  %v2378_v16 = vld [vmem:[%s3448_s1 + $0x328] ss:$28 sps:$4 sm:$0xff]   ;;  %v2890_v17 = vpack.c.bf16 %v28_v9, %v28_v9 }
  0x23   :  { %1528 = vmatpush1.bf16.xpose.msra.mxu0 %v2302_v18  ;;  %1569 = vmatpush1.bf16.xpose.msra.mxu1 %v2303_v19  ;;  %v2892_v18 = vpack.c.bf16 %v27_v10, %v27_v10 }
  0x24   :  { %1529 = vmatprep.subr.bf16.mxu0 %v2304_v20  ;;  %1570 = vmatprep.subr.bf16.mxu1 %v2306_v21 }
  0x2b   :  { %1530 = vmatpush1.bf16.xpose.msra.mxu0 %v2308_v22  ;;  %1571 = vmatpush1.bf16.xpose.msra.mxu1 %v2309_v23 }
  0x2c   :  { %1531 = vmatprep.subr.bf16.mxu0 %v2310_v24  ;;  %1572 = vmatprep.subr.bf16.mxu1 %v2312_v25 }
  0x33   :  { %1532 = vmatpush1.bf16.xpose.msra.mxu0 %v2314_v30  ;;  %1573 = vmatpush1.bf16.xpose.msra.mxu1 %v2315_v31 }
  0x34   :  { %1533 = vmatprep.subr.bf16.mxu0 %v2316_v32  ;;  %1574 = vmatprep.subr.bf16.mxu1 %v2318_v33 }
  0x3b   :  { %1534 = vmatpush1.bf16.xpose.msra.mxu0 %v2320_v34  ;;  %1575 = vmatpush1.bf16.xpose.msra.mxu1 %v2321_v35 }
  0x3c   :  { %1535 = vmatprep.subr.bf16.mxu0 %v2322_v36  ;;  %1576 = vmatprep.subr.bf16.mxu1 %v2324_v37 }
  0x43   :  { %1536 = vmatpush2.bf16.xpose.msra.mxu0 %v2326_v38  ;;  %1577 = vmatpush2.bf16.xpose.msra.mxu1 %v2327_v39 }
  0x44   :  { %1537 = vmatprep.subr.bf16.mxu0 %v2328_v40  ;;  %1578 = vmatprep.subr.bf16.mxu1 %v2330_v41 }
  0x4b   :  { %1538 = vmatpush2.bf16.xpose.msra.mxu0 %v2332_v42  ;;  %1579 = vmatpush2.bf16.xpose.msra.mxu1 %v2333_v43 }
  0x4c   :  { %1539 = vmatprep.subr.bf16.mxu0 %v2334_v44  ;;  %1580 = vmatprep.subr.bf16.mxu1 %v2336_v45 }
  0x53   :  { %1540 = vmatpush2.bf16.xpose.msra.mxu0 %v2338_v46  ;;  %1581 = vmatpush2.bf16.xpose.msra.mxu1 %v2339_v47 }
  0x54   :  { %1541 = vmatprep.subr.bf16.mxu0 %v2340_v48  ;;  %1582 = vmatprep.subr.bf16.mxu1 %v2342_v49 }
  0x5b   :  { %1542 = vmatpush2.bf16.xpose.msra.mxu0 %v2344_v50  ;;  %1583 = vmatpush2.bf16.xpose.msra.mxu1 %v2345_v51 }
  0x5c   :  { %1543 = vmatprep.subr.bf16.mxu0 %v2346_v52  ;;  %1584 = vmatprep.subr.bf16.mxu1 %v2348_v53 }
  0x63   :  { %1544 = vmatpush2.bf16.xpose.msra.mxu0 %v2350_v54  ;;  %1585 = vmatpush2.bf16.xpose.msra.mxu1 %v2351_v55 }
  0x64   :  { %1545 = vmatprep.subr.bf16.mxu0 %v2352_v56  ;;  %1586 = vmatprep.subr.bf16.mxu1 %v2354_v57 }
  0x6b   :  { %1546 = vmatpush2.bf16.xpose.msra.mxu0 %v2356_v58  ;;  %1587 = vmatpush2.bf16.xpose.msra.mxu1 %v2357_v59 }
  0x6c   :  { %1547 = vmatprep.subr.bf16.mxu0 %v2358_v60  ;;  %1588 = vmatprep.subr.bf16.mxu1 %v2360_v61 }
  0x73   :  { %1548 = vmatpush2.bf16.xpose.msra.mxu0 %v2362_v62  ;;  %1589 = vmatpush2.bf16.xpose.msra.mxu1 %v2363_v63 }
  0x74   :  { %1549 = vmatprep.subr.bf16.mxu0 %v2364_v0  ;;  %1590 = vmatprep.subr.bf16.mxu1 %v2366_v1 }
  0x7b   :  { %1550 = vmatpush2.bf16.xpose.msra.mxu0 %v2368_v2  ;;  %1591 = vmatpush2.bf16.xpose.msra.mxu1 %v2369_v3 }
  0x7c   :  { %1601 = vmatprep.subr.bf16.mxu0 %v2372_v4  ;;  %2257 = vmatprep.subr.msk.bf16.mxu1 %vm1419_vm0, %v2373_v5 }
  0x7d   :  { %10 = vsyncpa [#allocation3], 0  ;;  %v2379_v19 = vld [vmem:[%s3448_s1 + $0x168] ss:$28 sps:$4 sm:$0xff]   ;;  %v2375_v20 = vld [vmem:[%s3448_s1 + $0x160] ss:$28 sps:$4 sm:$0xff]  }
  0x7e   :  { %v1442_v21 = vsel %vm1419_vm0, %v2379_v19, 0  ;;  %v2382_v22 = vld [vmem:[%s3448_s1 + $0x12c] ss:$28 sps:$4 sm:$0xff]   ;;  %v2387_v28 = vld [vmem:[%s3448_s1 + $0xf4] ss:$28 sps:$4 sm:$0xff]   ;;  %vm1885_vm1 = vcmask 949248  }
  0x7f   :  { %v2383_v23 = vld [vmem:[%s3448_s1 + $0x2f0] ss:$28 sps:$4 sm:$0xff]   ;;  %v2380_v25 = vld [vmem:[%s3448_s1 + $0x128] ss:$28 sps:$4 sm:$0xff]   ;;  %v2388_v30 = vld [vmem:[%s3448_s1 + $0x2b8] ss:$28 sps:$4 sm:$0xff]  }
  0x80   :  { %v2384_v24 = vld [vmem:[%s3448_s1 + $0x130] ss:$28 sps:$4 sm:$0xff]   ;;  %v2389_v31 = vld [vmem:[%s3448_s1 + $0xf8] ss:$28 sps:$4 sm:$0xff]   ;;  %v2393_v35 = vld [vmem:[%s3448_s1 + $0x280] ss:$28 sps:$4 sm:$0xff]  }
  0x81   :  { %v1439_v26 = vsel %vm1419_vm0, %v2384_v24, 0  ;;  %v2385_v32 = vld [vmem:[%s3448_s1 + $0xf0] ss:$28 sps:$4 sm:$0xff]   ;;  %v1436_v33 = vsel %vm1419_vm0, %v2389_v31, 0  ;;  %v2392_v34 = vld [vmem:[%s3448_s1 + $0xbc] ss:$28 sps:$4 sm:$0xff]  }
  0x82   :  { %1552 = vmatmul.mubr.bf16.vlgmr.msra.gmra.mxu0 %v2879_v12  ;;  %1593 = vmatmul.mubr.bf16.vlgmr.msra.gmra.mxu1 %v2881_v13  ;;  %v2394_v36 = vld [vmem:[%s3448_s1 + $0xc0] ss:$28 sps:$4 sm:$0xff]   ;;  %v2390_v37 = vld [vmem:[%s3448_s1 + $0xb8] ss:$28 sps:$4 sm:$0xff]   ;;  %v2398_v40 = vld [vmem:[%s3448_s1 + $0x248] ss:$28 sps:$4 sm:$0xff]  }
  0x83   :  { %1602 = vmatpush1.bf16.xpose.msra.mxu0 %v2370_v11  ;;  %2222 = vmatpush3.bf16.xpose.msra.mxu1 %v1445_v15  ;;  %v1433_v38 = vsel %vm1419_vm0, %v2394_v36, 0  ;;  %v2397_v39 = vld [vmem:[%s3448_s1 + $0x84] ss:$28 sps:$4 sm:$0xff]   ;;  %v2402_v44 = vld [vmem:[%s3448_s1 + $0x4c] ss:$28 sps:$4 sm:$0xff]   ;;  %s2619_s22 = smov [#allocation2]  }
  0x84   :  { %1603 = vmatprep.subr.bf16.mxu0 %v2377_v14  ;;  %2258 = vmatprep.subr.msk.bf16.mxu1 %vm1419_vm0, %v2378_v16  ;;  %v2399_v41 = vld [vmem:[%s3448_s1 + $0x88] ss:$28 sps:$4 sm:$0xff]   ;;  %v2395_v42 = vld [vmem:[%s3448_s1 + $0x80] ss:$28 sps:$4 sm:$0xff]   ;;  %v2403_v45 = vld [vmem:[%s3448_s1 + $0x210] ss:$28 sps:$4 sm:$0xff]  }
  0x85   :  { %2237 = vmatprep.mubr.msk.bf16.mxu1 %vm1419_vm0, %v2890_v17  ;;  %1633 = vmatprep.mubr.bf16.mxu0 %v2892_v18  ;;  %v1430_v43 = vsel %vm1419_vm0, %v2399_v41, 0  ;;  %v2404_v46 = vld [vmem:[%s3448_s1 + $0x50] ss:$28 sps:$4 sm:$0xff]   ;;  %v2400_v47 = vld [vmem:[%s3448_s1 + $0x48] ss:$28 sps:$4 sm:$0xff]   ;;  %vm1972_vm2 = vcmask 80896  }
  0x86   :  { %v1427_v48 = vsel %vm1419_vm0, %v2404_v46, 0  ;;  %v2407_v49 = vld [vmem:[%s3448_s1 + $0x14] ss:$28 sps:$4 sm:$0xff]   ;;  %v2412_v54 = vld [vmem:[%s3448_s1 + $0x35c] ss:$28 sps:$4 sm:$0xff]  }
  0x87   :  { %v2408_v50 = vld [vmem:[%s3448_s1 + $0x1d8] ss:$28 sps:$4 sm:$0xff]   ;;  %v2405_v52 = vld [vmem:[%s3448_s1 + $0x10] ss:$28 sps:$4 sm:$0xff]   ;;  %v2413_v57 = vld [vmem:[%s3448_s1 + $0x508] ss:$28 sps:$4 sm:$0xff]  }
  0x88   :  { %v2409_v51 = vld [vmem:[%s3448_s1 + $0x18] ss:$28 sps:$4 sm:$0xff]   ;;  %v2415_v55 = vld [vmem:[%s3448_s1 + $0x50c] ss:$28 sps:$4 sm:$0xff]   ;;  %v2418_v58 = vld [vmem:[%s3448_s1 + $0x324] ss:$28 sps:$4 sm:$0xff]  }
  0x89   :  { %v1424_v53 = vsel %vm1419_vm0, %v2409_v51, 0  ;;  %v2410_v56 = vld [vmem:[%s3448_s1 + $0x358] ss:$28 sps:$4 sm:$0xff]   ;;  %v2416_v60 = vld [vmem:[%s3448_s1 + $0x320] ss:$28 sps:$4 sm:$0xff]  }
  0x8a   :  { %v2421_v59 = vld [vmem:[%s3448_s1 + $0x4d4] ss:$28 sps:$4 sm:$0xff]   ;;  %v2424_v62 = vld [vmem:[%s3448_s1 + $0x2ec] ss:$28 sps:$4 sm:$0xff]   ;;  %v2427_v63 = vld [vmem:[%s3448_s1 + $0x49c] ss:$28 sps:$4 sm:$0xff]  }
  0x8b   :  { %1604 = vmatpush1.bf16.xpose.msra.mxu0 %v2375_v20  ;;  %2224 = vmatpush3.bf16.xpose.msra.mxu1 %v1442_v21  ;;  %v2419_v61 = vld [vmem:[%s3448_s1 + $0x4d0] ss:$28 sps:$4 sm:$0xff]   ;;  %v2425_v0 = vld [vmem:[%s3448_s1 + $0x498] ss:$28 sps:$4 sm:$0xff]   ;;  %v2433_v2 = vld [vmem:[%s3448_s1 + $0x464] ss:$28 sps:$4 sm:$0xff]  }
  0x8c   :  { %1605 = vmatprep.subr.bf16.mxu0 %v2382_v22  ;;  %2259 = vmatprep.subr.msk.bf16.mxu1 %vm1419_vm0, %v2383_v23  ;;  %v2430_v1 = vld [vmem:[%s3448_s1 + $0x2b4] ss:$28 sps:$4 sm:$0xff]   ;;  %v2431_v4 = vld [vmem:[%s3448_s1 + $0x460] ss:$28 sps:$4 sm:$0xff]   ;;  %v2439_v6 = vld [vmem:[%s3448_s1 + $0x42c] ss:$28 sps:$4 sm:$0xff]  }
  0x8d   :  { %v2428_v3 = vld [vmem:[%s3448_s1 + $0x2b0] ss:$28 sps:$4 sm:$0xff]   ;;  %v2436_v5 = vld [vmem:[%s3448_s1 + $0x27c] ss:$28 sps:$4 sm:$0xff]   ;;  %v2437_v8 = vld [vmem:[%s3448_s1 + $0x428] ss:$28 sps:$4 sm:$0xff]  }
  0x8e   :  { %v2434_v7 = vld [vmem:[%s3448_s1 + $0x278] ss:$28 sps:$4 sm:$0xff]   ;;  %v2442_v9 = vld [vmem:[%s3448_s1 + $0x244] ss:$28 sps:$4 sm:$0xff]   ;;  %v2443_v14 = vld [vmem:[%s3448_s1 + $0x3f0] ss:$28 sps:$4 sm:$0xff]  }
  0x8f   :  { %v2445_v10 = vld [vmem:[%s3448_s1 + $0x3f4] ss:$28 sps:$4 sm:$0xff]   ;;  %v2440_v11 = vld [vmem:[%s3448_s1 + $0x240] ss:$28 sps:$4 sm:$0xff]   ;;  %v2448_v15 = vld [vmem:[%s3448_s1 + $0x20c] ss:$28 sps:$4 sm:$0xff]  }
  0x90   :  { %v2451_v16 = vld [vmem:[%s3448_s1 + $0x3bc] ss:$28 sps:$4 sm:$0xff]   ;;  %v2446_v19 = vld [vmem:[%s3448_s1 + $0x208] ss:$28 sps:$4 sm:$0xff]   ;;  %v2454_v21 = vld [vmem:[%s3448_s1 + $0x1d4] ss:$28 sps:$4 sm:$0xff]  }
  0x91   :  { %v2449_v20 = vld [vmem:[%s3448_s1 + $0x3b8] ss:$28 sps:$4 sm:$0xff]   ;;  %v2457_v22 = vld [vmem:[%s3448_s1 + $0x384] ss:$28 sps:$4 sm:$0xff]   ;;  %v284_v23 = vld [vmem:[%s3448_s1 + $0x6c8] sm:$0x33] }
  0x92   :  { %v2452_v24 = vld [vmem:[%s3448_s1 + $0x1d0] ss:$28 sps:$4 sm:$0xff]   ;;  %v2477_v41 = vld [vmem:[%s3448_s1 + $0x624] ss:$28 sps:$4 sm:$0xff]  }
  0x93   :  { %1606 = vmatpush1.bf16.xpose.msra.mxu0 %v2380_v25  ;;  %2226 = vmatpush3.bf16.xpose.msra.mxu1 %v1439_v26  ;;  %v2455_v25 = vld [vmem:[%s3448_s1 + $0x380] ss:$28 sps:$4 sm:$0xff]   ;;  %v2206_v26 = vcombine.high %v284_v23, %v284_v23  ;;  %v2463_v36 = vld [vmem:[%s3448_s1 + $0x690] ss:$28 sps:$4 sm:$0xff]  }
  0x94   :  { %1607 = vmatprep.subr.bf16.mxu0 %v2387_v28  ;;  %2260 = vmatprep.subr.msk.bf16.mxu1 %vm1419_vm0, %v2388_v30  ;;  %v2462_v28 = vld [vmem:[%s3448_s1 + $0x514] ss:$28 sps:$4 sm:$0xff]   ;;  %v26_v30 = vld [vmem:[%s3447_s0 + $0x20] sm:$0xff]  ;;  %s1980_s0 = sshll.u32 %s2619_s22, 4  ;;  %s1981_s0 = int_to_ptr.vmem [resolvable:$true] %s1980_s0 }
  0x95   :  { %v3099_v31 = vpack.c.bf16 %v26_v30, %v26_v30  ;;  %v2486_v46 = vld [vmem:[%s3448_s1 + $0x434] ss:$28 sps:$4 sm:$0xff]   ;;  %v2516_v30 = vld [vmem:[%s3448_s1 + $0x660] ss:$28 sps:$4 sm:$0xff]   ;;  %s2597_s23 = scalar_lea.vmem %s1981_s0, 128  ;;  %p2602_p1 = scmp.lt.s32.totalorder %s1981_s0, %s1981_s0 }
  0x96   :  { %v2487_v51 = vld [vmem:[%s3448_s1 + $0x5b0] ss:$28 sps:$4 sm:$0xff]   ;;  %p2598_p0 = scmp.ne.s32.totalorder %s1981_s0, %s2597_s23  ;;  %p2603_p2 = scmp.lt.s32.totalorder %s2597_s23, %s2597_s23 }
  0x98   :  { %p2604_p3 = por %p2603_p2, %p2602_p1 }
  0x9a   :  { %p2605_p4 = pnand %p2604_p3, %p2598_p0 }
  0x9b   :  { %1608 = vmatpush1.bf16.xpose.msra.mxu0 %v2385_v32  ;;  %2228 = vmatpush3.bf16.xpose.msra.mxu1 %v1436_v33  ;;  %v2205_v32 = vcombine.low %v284_v23, %v284_v23  ;;  %v2460_v33 = vld [vmem:[%s3448_s1 + $0x510] ss:$28 sps:$4 sm:$0xff]  }
  0x9c   :  { %1609 = vmatprep.subr.bf16.mxu0 %v2392_v34  ;;  %2261 = vmatprep.subr.msk.bf16.mxu1 %vm1419_vm0, %v2393_v35  ;;  %v2465_v34 = vld [vmem:[%s3448_s1 + $0x694] ss:$28 sps:$4 sm:$0xff]   ;;  %v2468_v35 = vld [vmem:[%s3448_s1 + $0x4dc] ss:$28 sps:$4 sm:$0xff]  }
  0xa3   :  { %1610 = vmatpush1.bf16.xpose.msra.mxu0 %v2390_v37  ;;  %2230 = vmatpush3.bf16.xpose.msra.mxu1 %v1433_v38  ;;  %v2466_v37 = vld [vmem:[%s3448_s1 + $0x4d8] ss:$28 sps:$4 sm:$0xff]  }
  0xa4   :  { %1611 = vmatprep.subr.bf16.mxu0 %v2397_v39  ;;  %2262 = vmatprep.subr.msk.bf16.mxu1 %vm1419_vm0, %v2398_v40  ;;  %v2471_v38 = vld [vmem:[%s3448_s1 + $0x65c] ss:$28 sps:$4 sm:$0xff]   ;;  %v2474_v39 = vld [vmem:[%s3448_s1 + $0x4a4] ss:$28 sps:$4 sm:$0xff]  }
  0xa5   :  { %v2472_v40 = vld [vmem:[%s3448_s1 + $0x4a0] ss:$28 sps:$4 sm:$0xff]  }
  0xab   :  { %1612 = vmatpush1.bf16.xpose.msra.mxu0 %v2395_v42  ;;  %2232 = vmatpush3.bf16.xpose.msra.mxu1 %v1430_v43  ;;  %v2480_v42 = vld [vmem:[%s3448_s1 + $0x46c] ss:$28 sps:$4 sm:$0xff]   ;;  %v2475_v43 = vld [vmem:[%s3448_s1 + $0x620] ss:$28 sps:$4 sm:$0xff]  }
  0xac   :  { %1613 = vmatprep.subr.bf16.mxu0 %v2402_v44  ;;  %2263 = vmatprep.subr.msk.bf16.mxu1 %vm1419_vm0, %v2403_v45  ;;  %v2478_v44 = vld [vmem:[%s3448_s1 + $0x468] ss:$28 sps:$4 sm:$0xff]  }
  0xad   :  { %v2483_v45 = vld [vmem:[%s3448_s1 + $0x5ec] ss:$28 sps:$4 sm:$0xff]  }
  0xb3   :  { %1614 = vmatpush1.bf16.xpose.msra.mxu0 %v2400_v47  ;;  %2234 = vmatpush3.bf16.xpose.msra.mxu1 %v1427_v48  ;;  %v2481_v47 = vld [vmem:[%s3448_s1 + $0x5e8] ss:$28 sps:$4 sm:$0xff]   ;;  %v2484_v48 = vld [vmem:[%s3448_s1 + $0x430] ss:$28 sps:$4 sm:$0xff]  }
  0xb4   :  { %1615 = vmatprep.subr.bf16.mxu0 %v2407_v49  ;;  %2264 = vmatprep.subr.msk.bf16.mxu1 %vm1419_vm0, %v2408_v50  ;;  %v2489_v49 = vld [vmem:[%s3448_s1 + $0x5b4] ss:$28 sps:$4 sm:$0xff]   ;;  %v2492_v50 = vld [vmem:[%s3448_s1 + $0x3fc] ss:$28 sps:$4 sm:$0xff]  }
  0xbb   :  { %1616 = vmatpush1.bf16.xpose.msra.mxu0 %v2405_v52  ;;  %2236 = vmatpush3.bf16.xpose.msra.mxu1 %v1424_v53  ;;  %v2490_v52 = vld [vmem:[%s3448_s1 + $0x3f8] ss:$28 sps:$4 sm:$0xff]  }
  0xbc   :  { %1617 = vmatprep.subr.bf16.mxu0 %v2412_v54  ;;  %1683 = vmatprep.subr.bf16.mxu1 %v2415_v55  ;;  %v2495_v53 = vld [vmem:[%s3448_s1 + $0x57c] ss:$28 sps:$4 sm:$0xff]   ;;  %v2498_v54 = vld [vmem:[%s3448_s1 + $0x3c4] ss:$28 sps:$4 sm:$0xff]  }
  0xbd   :  { %v2493_v55 = vld [vmem:[%s3448_s1 + $0x578] ss:$28 sps:$4 sm:$0xff]  }
  0xc2   :  { %2238 = vmatmul.mubr.msk.bf16.vlgmr.msra.gmra.mxu1 %vm1419_vm0, %v2890_v17 }
  0xc3   :  { %1618 = vmatpush2.bf16.xpose.msra.mxu0 %v2410_v56  ;;  %1684 = vmatpush1.bf16.xpose.msra.mxu1 %v2413_v57  ;;  %v2496_v56 = vld [vmem:[%s3448_s1 + $0x3c0] ss:$28 sps:$4 sm:$0xff]  }
  0xc4   :  { %1619 = vmatprep.subr.bf16.mxu0 %v2418_v58  ;;  %1685 = vmatprep.subr.bf16.mxu1 %v2421_v59  ;;  %v2501_v57 = vld [vmem:[%s3448_s1 + $0x544] ss:$28 sps:$4 sm:$0xff]   ;;  %v2504_v58 = vld [vmem:[%s3448_s1 + $0x38c] ss:$28 sps:$4 sm:$0xff]   ;;  %v290_v59 = vlaneseq }
  0xc5   :  { %1715 = vmatprep.mubr.bf16.mxu1 %v2731_v27  ;;  %v2422_v27 = vld [vmem:[%s3448_s1 + $0x2e8] ss:$28 sps:$4 sm:$0xff]  }
  0xcb   :  { %1620 = vmatpush2.bf16.xpose.msra.mxu0 %v2416_v60  ;;  %1686 = vmatpush1.bf16.xpose.msra.mxu1 %v2419_v61  ;;  %v285_v60 = vld [vmem:[%s3448_s1 + $0x6d0] sm:$0x33]  ;;  %v2499_v61 = vld [vmem:[%s3448_s1 + $0x540] ss:$28 sps:$4 sm:$0xff]  }
  0xcc   :  { %1621 = vmatprep.subr.bf16.mxu0 %v2424_v62  ;;  %1687 = vmatprep.subr.bf16.mxu1 %v2427_v63  ;;  %v2502_v62 = vld [vmem:[%s3448_s1 + $0x388] ss:$28 sps:$4 sm:$0xff]   ;;  %v3193_v63 = vshrl.u32 %v290_v59, 7 }
  0xcd   :  { %v2559_v59 = vld [vmem:[%s3448_s1 + $0x6a8] ss:$28 sps:$4 sm:$0xff]  }
  0xd3   :  { %1622 = vmatpush2.bf16.xpose.msra.mxu0 %v2422_v27  ;;  %1688 = vmatpush1.bf16.xpose.msra.mxu1 %v2425_v0  ;;  %v2208_v27 = vcombine.high %v285_v60, %v285_v60  ;;  %v2509_v0 = vld [vmem:[%s3448_s1 + $0x51c] ss:$28 sps:$4 sm:$0xff]  }
  0xd4   :  { %1623 = vmatprep.subr.bf16.mxu0 %v2430_v1  ;;  %1689 = vmatprep.subr.bf16.mxu1 %v2433_v2  ;;  %v292_v1 = vsub.s32 0, %v3193_v63  ;;  %v3202_v2 = vld [vmem:[%s3449_s2] sm:$0xf] }
  0xdb   :  { %1624 = vmatpush2.bf16.xpose.msra.mxu0 %v2428_v3  ;;  %1690 = vmatpush1.bf16.xpose.msra.mxu1 %v2431_v4  ;;  %v296_v3 = vsub.s32 1, %v3193_v63  ;;  %v293_v4 = vrot.slane %v3202_v2, %v292_v1 }
  0xdc   :  { %1625 = vmatprep.subr.bf16.mxu0 %v2436_v5  ;;  %1691 = vmatprep.subr.bf16.mxu1 %v2439_v6  ;;  %v2207_v5 = vcombine.low %v285_v60, %v285_v60  ;;  %v2507_v6 = vld [vmem:[%s3448_s1 + $0x518] ss:$28 sps:$4 sm:$0xff]  }
  0xe3   :  { %1626 = vmatpush2.bf16.xpose.msra.mxu0 %v2434_v7  ;;  %1692 = vmatpush1.bf16.xpose.msra.mxu1 %v2437_v8  ;;  %v2512_v7 = vld [vmem:[%s3448_s1 + $0x69c] ss:$28 sps:$4 sm:$0xff]   ;;  %v2515_v8 = vld [vmem:[%s3448_s1 + $0x4e4] ss:$28 sps:$4 sm:$0xff]  }
  0xe4   :  { %1627 = vmatprep.subr.bf16.mxu0 %v2442_v9  ;;  %1693 = vmatprep.subr.bf16.mxu1 %v2445_v10  ;;  %v297_v9 = vrot.slane %v3202_v2, %v296_v3  ;;  %v2563_v3 = vld [vmem:[%s3448_s1 + $0x66c] ss:$28 sps:$4 sm:$0xff]  }
  0xeb   :  { %1628 = vmatpush2.bf16.xpose.msra.mxu0 %v2440_v11  ;;  %1694 = vmatpush1.bf16.xpose.msra.mxu1 %v2443_v14 }
  0xec   :  { %1629 = vmatprep.subr.bf16.mxu0 %v2448_v15  ;;  %1695 = vmatprep.subr.bf16.mxu1 %v2451_v16 }
  0xf3   :  { %1630 = vmatpush2.bf16.xpose.msra.mxu0 %v2446_v19  ;;  %1696 = vmatpush1.bf16.xpose.msra.mxu1 %v2449_v20 }
  0xf4   :  { %1631 = vmatprep.subr.bf16.mxu0 %v2454_v21  ;;  %1697 = vmatprep.subr.bf16.mxu1 %v2457_v22 }
  0xfb   :  { %1632 = vmatpush2.bf16.xpose.msra.mxu0 %v2452_v24  ;;  %1698 = vmatpush1.bf16.xpose.msra.mxu1 %v2455_v25  ;;  %v2513_v24 = vld [vmem:[%s3448_s1 + $0x4e0] ss:$28 sps:$4 sm:$0xff]  }
  0xfc   :  { %1699 = vmatprep.subr.bf16.mxu1 %v2206_v26  ;;  %1724 = vmatprep.subr.bf16.mxu0 %v2462_v28  ;;  %v2518_v28 = vld [vmem:[%s3448_s1 + $0x664] ss:$28 sps:$4 sm:$0xff]  }
 0x102   :  { %1634 = vmatmul.mubr.bf16.vlgmr.msra.gmra.mxu0 %v3099_v31 }
 0x103   :  { %1700 = vmatpush2.bf16.xpose.msra.mxu1 %v2205_v32  ;;  %1725 = vmatpush1.bf16.xpose.msra.mxu0 %v2460_v33  ;;  %v2519_v32 = vld [vmem:[%s3448_s1 + $0x4a8] ss:$28 sps:$4 sm:$0xff]  }
 0x104   :  { %1701 = vmatprep.subr.bf16.mxu1 %v2465_v34  ;;  %1726 = vmatprep.subr.bf16.mxu0 %v2468_v35  ;;  %v2524_v33 = vld [vmem:[%s3448_s1 + $0x62c] ss:$28 sps:$4 sm:$0xff]   ;;  %v2527_v34 = vld [vmem:[%s3448_s1 + $0x474] ss:$28 sps:$4 sm:$0xff]  }
 0x105   :  { %1756 = vmatprep.mubr.bf16.mxu0 %v2736_v29  ;;  %v2469_v29 = vld [vmem:[%s3448_s1 + $0x658] ss:$28 sps:$4 sm:$0xff]   ;;  %v2522_v35 = vld [vmem:[%s3448_s1 + $0x628] ss:$28 sps:$4 sm:$0xff]  }
 0x10b   :  { %1702 = vmatpush2.bf16.xpose.msra.mxu1 %v2463_v36  ;;  %1727 = vmatpush1.bf16.xpose.msra.mxu0 %v2466_v37  ;;  %v2525_v36 = vld [vmem:[%s3448_s1 + $0x470] ss:$28 sps:$4 sm:$0xff]  }
 0x10c   :  { %1703 = vmatprep.subr.bf16.mxu1 %v2471_v38  ;;  %1728 = vmatprep.subr.bf16.mxu0 %v2474_v39  ;;  %v2530_v37 = vld [vmem:[%s3448_s1 + $0x5f4] ss:$28 sps:$4 sm:$0xff]   ;;  %v2533_v38 = vld [vmem:[%s3448_s1 + $0x43c] ss:$28 sps:$4 sm:$0xff]  }
 0x10d   :  { %v2528_v39 = vld [vmem:[%s3448_s1 + $0x5f0] ss:$28 sps:$4 sm:$0xff]  }
 0x113   :  { %1704 = vmatpush2.bf16.xpose.msra.mxu1 %v2469_v29  ;;  %1729 = vmatpush1.bf16.xpose.msra.mxu0 %v2472_v40  ;;  %v2531_v29 = vld [vmem:[%s3448_s1 + $0x438] ss:$28 sps:$4 sm:$0xff]  }
 0x114   :  { %1705 = vmatprep.subr.bf16.mxu1 %v2477_v41  ;;  %1730 = vmatprep.subr.bf16.mxu0 %v2480_v42  ;;  %v2536_v40 = vld [vmem:[%s3448_s1 + $0x5bc] ss:$28 sps:$4 sm:$0xff]   ;;  %v2539_v41 = vld [vmem:[%s3448_s1 + $0x404] ss:$28 sps:$4 sm:$0xff]  }
 0x115   :  { %v2534_v42 = vld [vmem:[%s3448_s1 + $0x5b8] ss:$28 sps:$4 sm:$0xff]  }
 0x11b   :  { %1706 = vmatpush2.bf16.xpose.msra.mxu1 %v2475_v43  ;;  %1731 = vmatpush1.bf16.xpose.msra.mxu0 %v2478_v44  ;;  %v2537_v43 = vld [vmem:[%s3448_s1 + $0x400] ss:$28 sps:$4 sm:$0xff]  }
 0x11c   :  { %1707 = vmatprep.subr.bf16.mxu1 %v2483_v45  ;;  %1732 = vmatprep.subr.bf16.mxu0 %v2486_v46  ;;  %v2542_v44 = vld [vmem:[%s3448_s1 + $0x584] ss:$28 sps:$4 sm:$0xff]   ;;  %v2545_v45 = vld [vmem:[%s3448_s1 + $0x3cc] ss:$28 sps:$4 sm:$0xff]  }
 0x11d   :  { %v2540_v46 = vld [vmem:[%s3448_s1 + $0x580] ss:$28 sps:$4 sm:$0xff]  }
 0x123   :  { %1708 = vmatpush2.bf16.xpose.msra.mxu1 %v2481_v47  ;;  %1733 = vmatpush1.bf16.xpose.msra.mxu0 %v2484_v48  ;;  %v2543_v47 = vld [vmem:[%s3448_s1 + $0x3c8] ss:$28 sps:$4 sm:$0xff]  }
 0x124   :  { %1709 = vmatprep.subr.bf16.mxu1 %v2489_v49  ;;  %1734 = vmatprep.subr.bf16.mxu0 %v2492_v50  ;;  %v2548_v48 = vld [vmem:[%s3448_s1 + $0x54c] ss:$28 sps:$4 sm:$0xff]   ;;  %v2551_v49 = vld [vmem:[%s3448_s1 + $0x394] ss:$28 sps:$4 sm:$0xff]   ;;  %v286_v50 = vld [vmem:[%s3448_s1 + $0x6d8] sm:$0x33] }
 0x12b   :  { %1710 = vmatpush2.bf16.xpose.msra.mxu1 %v2487_v51  ;;  %1735 = vmatpush1.bf16.xpose.msra.mxu0 %v2490_v52  ;;  %v2546_v51 = vld [vmem:[%s3448_s1 + $0x548] ss:$28 sps:$4 sm:$0xff]   ;;  %v2549_v52 = vld [vmem:[%s3448_s1 + $0x390] ss:$28 sps:$4 sm:$0xff]  }
 0x12c   :  { %1711 = vmatprep.subr.bf16.mxu1 %v2495_v53  ;;  %1736 = vmatprep.subr.bf16.mxu0 %v2498_v54  ;;  %v2210_v53 = vcombine.high %v286_v50, %v286_v50  ;;  %v2554_v54 = vld [vmem:[%s3448_s1 + $0x6e0] ss:$0 sps:$4 sm:$0x33]  }
 0x133   :  { %1712 = vmatpush2.bf16.xpose.msra.mxu1 %v2493_v55  ;;  %1737 = vmatpush1.bf16.xpose.msra.mxu0 %v2496_v56  ;;  %v2555_v55 = vld [vmem:[%s3448_s1 + $0x520] ss:$28 sps:$4 sm:$0xff]   ;;  %v2209_v56 = vcombine.low %v286_v50, %v286_v50 }
 0x134   :  { %1713 = vmatprep.subr.bf16.mxu1 %v2501_v57  ;;  %1738 = vmatprep.subr.bf16.mxu0 %v2504_v58  ;;  %v1493_v57 = vsel %vm1419_vm0, %v2555_v55, 0  ;;  %v2558_v58 = vld [vmem:[%s3448_s1 + $0x6a4] ss:$28 sps:$4 sm:$0xff]   ;;  %v300_v55 = vsub.s32 2, %v3193_v63 }
 0x13b   :  { %1714 = vmatpush2.bf16.xpose.msra.mxu1 %v2499_v61  ;;  %1739 = vmatpush1.bf16.xpose.msra.mxu0 %v2502_v62  ;;  %v2560_v62 = vld [vmem:[%s3448_s1 + $0x4e8] ss:$28 sps:$4 sm:$0xff]  }
 0x13c   :  { %1740 = vmatprep.subr.bf16.mxu0 %v2208_v27  ;;  %1765 = vmatprep.subr.bf16.mxu1 %v2509_v0  ;;  %v2556_v0 = vld [vmem:[%s3448_s1 + $0x6a0] ss:$28 sps:$4 sm:$0xff]   ;;  %v1490_v1 = vsel %vm1419_vm0, %v2560_v62, 0 }
 0x142   :  { %v1553_v10 = vpop.f32.mrf.mxu0  ;;  %v1594_v11 = vpop.f32.mrf.mxu1  ;;  %1716 = vmatmul.mubr.bf16.vlgmr.msra.gmra.mxu1 %v2879_v12  ;;  %v2510_v12 = vld [vmem:[%s3448_s1 + $0x698] ss:$28 sps:$4 sm:$0xff]  }
 0x143   :  { %v1554_v14 = vadd.f32 %v1553_v10, %v293_v4  ;;  %1741 = vmatpush2.bf16.xpose.msra.mxu0 %v2207_v5  ;;  %1766 = vmatpush1.bf16.xpose.msra.mxu1 %v2507_v6  ;;  %v2564_v4 = vld [vmem:[%s3448_s1 + $0x670] ss:$28 sps:$4 sm:$0xff]   ;;  %v2561_v6 = vld [vmem:[%s3448_s1 + $0x668] ss:$28 sps:$4 sm:$0xff]   ;;  %v2570_v10 = vld [vmem:[%s3448_s1 + $0x478] ss:$28 sps:$4 sm:$0xff]  }
 0x144   :  { %v1555_v15 = vpop.f32.mrf.mxu0  ;;  %v1596_v16 = vpop.f32.mrf.mxu1  ;;  %1742 = vmatprep.subr.bf16.mxu0 %v2512_v7  ;;  %1767 = vmatprep.subr.bf16.mxu1 %v2515_v8  ;;  %v2565_v5 = vld [vmem:[%s3448_s1 + $0x4b0] ss:$28 sps:$4 sm:$0xff]  }
 0x145   :  { %v3217_v19 = vadd.f32 %v1594_v11, %v1554_v14  ;;  %v1556_v20 = vadd.f32 %v1555_v15, %v297_v9  ;;  %1797 = vmatprep.mubr.bf16.mxu1 %v2892_v18  ;;  %v2521_v18 = vld [vmem:[%s3448_s1 + $0x4ac] ss:$28 sps:$4 sm:$0xff]   ;;  %v1487_v7 = vsel %vm1419_vm0, %v2565_v5, 0  ;;  %v2568_v8 = vld [vmem:[%s3448_s1 + $0x634] ss:$28 sps:$4 sm:$0xff]   ;;  %v1484_v14 = vsel %vm1419_vm0, %v2570_v10, 0 }
 0x146   :  { %v1557_v21 = vpop.f32.mrf.mxu0  ;;  %v1598_v22 = vpop.f32.mrf.mxu1  ;;  %v2569_v9 = vld [vmem:[%s3448_s1 + $0x638] ss:$28 sps:$4 sm:$0xff]   ;;  %v2566_v11 = vld [vmem:[%s3448_s1 + $0x630] ss:$28 sps:$4 sm:$0xff]  }
 0x147   :  { %v3220_v23 = vadd.f32 %v1596_v16, %v1556_v20  ;;  %v2573_v15 = vld [vmem:[%s3448_s1 + $0x5fc] ss:$28 sps:$4 sm:$0xff]  }
 0x148   :  { %v1558_v25 = vpop.f32.mrf.mxu0  ;;  %v1599_v26 = vpop.f32.mrf.mxu1  ;;  %v2574_v16 = vld [vmem:[%s3448_s1 + $0x600] ss:$28 sps:$4 sm:$0xff]   ;;  %v2571_v21 = vld [vmem:[%s3448_s1 + $0x5f8] ss:$28 sps:$4 sm:$0xff]  }
 0x149   :  { %v2575_v20 = vld [vmem:[%s3448_s1 + $0x440] ss:$28 sps:$4 sm:$0xff]   ;;  %v2580_v25 = vld [vmem:[%s3448_s1 + $0x408] ss:$28 sps:$4 sm:$0xff]  }
 0x14a   :  { %v1481_v22 = vsel %vm1419_vm0, %v2575_v20, 0  ;;  %v2576_v26 = vld [vmem:[%s3448_s1 + $0x5c0] ss:$28 sps:$4 sm:$0xff]  }
 0x14b   :  { %1743 = vmatpush2.bf16.xpose.msra.mxu0 %v2510_v12  ;;  %1768 = vmatpush1.bf16.xpose.msra.mxu1 %v2513_v24  ;;  %v2578_v12 = vld [vmem:[%s3448_s1 + $0x5c4] ss:$28 sps:$4 sm:$0xff]  }
 0x14c   :  { %1744 = vmatprep.subr.bf16.mxu0 %v2518_v28  ;;  %1769 = vmatprep.subr.bf16.mxu1 %v2521_v18  ;;  %v2579_v24 = vld [vmem:[%s3448_s1 + $0x5c8] ss:$28 sps:$4 sm:$0xff]   ;;  %v1478_v28 = vsel %vm1419_vm0, %v2580_v25, 0 }
 0x14d   :  { %v2583_v18 = vld [vmem:[%s3448_s1 + $0x58c] ss:$28 sps:$4 sm:$0xff]  }
 0x153   :  { %1745 = vmatpush2.bf16.xpose.msra.mxu0 %v2516_v30  ;;  %1770 = vmatpush1.bf16.xpose.msra.mxu1 %v2519_v32  ;;  %v2584_v30 = vld [vmem:[%s3448_s1 + $0x590] ss:$28 sps:$4 sm:$0xff]  }
 0x154   :  { %1746 = vmatprep.subr.bf16.mxu0 %v2524_v33  ;;  %1771 = vmatprep.subr.bf16.mxu1 %v2527_v34  ;;  %v2585_v32 = vld [vmem:[%s3448_s1 + $0x3d0] ss:$28 sps:$4 sm:$0xff]   ;;  %v2581_v33 = vld [vmem:[%s3448_s1 + $0x588] ss:$28 sps:$4 sm:$0xff]  }
 0x155   :  { %v1475_v34 = vsel %vm1419_vm0, %v2585_v32, 0 }
 0x15b   :  { %1747 = vmatpush2.bf16.xpose.msra.mxu0 %v2522_v35  ;;  %1772 = vmatpush1.bf16.xpose.msra.mxu1 %v2525_v36  ;;  %v2588_v35 = vld [vmem:[%s3448_s1 + $0x554] ss:$28 sps:$4 sm:$0xff]  }
 0x15c   :  { %1748 = vmatprep.subr.bf16.mxu0 %v2530_v37  ;;  %1773 = vmatprep.subr.bf16.mxu1 %v2533_v38  ;;  %v2589_v36 = vld [vmem:[%s3448_s1 + $0x558] ss:$28 sps:$4 sm:$0xff]   ;;  %v2586_v38 = vld [vmem:[%s3448_s1 + $0x550] ss:$28 sps:$4 sm:$0xff]  }
 0x15d   :  { %v2590_v37 = vld [vmem:[%s3448_s1 + $0x398] ss:$28 sps:$4 sm:$0xff]  }
 0x163   :  { %1749 = vmatpush2.bf16.xpose.msra.mxu0 %v2528_v39  ;;  %1774 = vmatpush1.bf16.xpose.msra.mxu1 %v2531_v29  ;;  %v1472_v39 = vsel %vm1419_vm0, %v2590_v37, 0  ;;  %v2593_v29 = vld [vmem:[%s3450_s3 + $0x4] ss:$16 sps:$4 sm:$0x1f]  }
 0x164   :  { %1750 = vmatprep.subr.bf16.mxu0 %v2536_v40  ;;  %1775 = vmatprep.subr.bf16.mxu1 %v2539_v41  ;;  %v2591_v40 = vld [vmem:[%s3450_s3] ss:$16 sps:$4 sm:$0x1f]  }
 0x16b   :  { %1751 = vmatpush2.bf16.xpose.msra.mxu0 %v2534_v42  ;;  %1776 = vmatpush1.bf16.xpose.msra.mxu1 %v2537_v43 }
 0x16c   :  { %1752 = vmatprep.subr.bf16.mxu0 %v2542_v44  ;;  %1777 = vmatprep.subr.bf16.mxu1 %v2545_v45 }
 0x173   :  { %1753 = vmatpush2.bf16.xpose.msra.mxu0 %v2540_v46  ;;  %1778 = vmatpush1.bf16.xpose.msra.mxu1 %v2543_v47 }
 0x174   :  { %1754 = vmatprep.subr.bf16.mxu0 %v2548_v48  ;;  %1779 = vmatprep.subr.bf16.mxu1 %v2551_v49 }
 0x17b   :  { %1755 = vmatpush2.bf16.xpose.msra.mxu0 %v2546_v51  ;;  %1780 = vmatpush1.bf16.xpose.msra.mxu1 %v2549_v52 }
 0x17c   :  { %1781 = vmatprep.subr.bf16.mxu1 %v2210_v53  ;;  %2265 = vmatprep.subr.msk.bf16.mxu0 %vm1419_vm0, %v2554_v54 }
 0x182   :  { %v3317_v60 = vpop.f32.mrf.mxu1  ;;  %1757 = vmatmul.mubr.bf16.vlgmr.msra.gmra.mxu0 %v2881_v13 }
 0x183   :  { %1782 = vmatpush2.bf16.xpose.msra.mxu1 %v2209_v56  ;;  %2240 = vmatpush3.bf16.xpose.msra.mxu0 %v1493_v57  ;;  %v301_v56 = vrot.slane %v3202_v2, %v300_v55 }
 0x184   :  { %v3320_v61 = vpop.f32.mrf.mxu1  ;;  %1783 = vmatprep.subr.bf16.mxu1 %v2558_v58  ;;  %2266 = vmatprep.subr.msk.bf16.mxu0 %vm1419_vm0, %v2559_v59 }
 0x185   :  { %2255 = vmatprep.mubr.msk.bf16.mxu0 %vm1419_vm0, %v2890_v17 }
 0x186   :  { %v1680_v27 = vpop.f32.mrf.mxu1 }
 0x187   :  { %v304_v27 = vsub.s32 3, %v3193_v63 }
 0x188   :  { %v1681_v13 = vpop.f32.mrf.mxu1 }
 0x18b   :  { %1784 = vmatpush2.bf16.xpose.msra.mxu1 %v2556_v0  ;;  %2242 = vmatpush3.bf16.xpose.msra.mxu0 %v1490_v1  ;;  %v305_v0 = vrot.slane %v3202_v2, %v304_v27 }
 0x18c   :  { %1785 = vmatprep.subr.bf16.mxu1 %v2563_v3  ;;  %2267 = vmatprep.subr.msk.bf16.mxu0 %vm1419_vm0, %v2564_v4 }
 0x193   :  { %1786 = vmatpush2.bf16.xpose.msra.mxu1 %v2561_v6  ;;  %2244 = vmatpush3.bf16.xpose.msra.mxu0 %v1487_v7 }
 0x194   :  { %1787 = vmatprep.subr.bf16.mxu1 %v2568_v8  ;;  %2268 = vmatprep.subr.msk.bf16.mxu0 %vm1419_vm0, %v2569_v9 }
 0x19b   :  { %1788 = vmatpush2.bf16.xpose.msra.mxu1 %v2566_v11  ;;  %2246 = vmatpush3.bf16.xpose.msra.mxu0 %v1484_v14 }
 0x19c   :  { %1789 = vmatprep.subr.bf16.mxu1 %v2573_v15  ;;  %2269 = vmatprep.subr.msk.bf16.mxu0 %vm1419_vm0, %v2574_v16 }
 0x1a3   :  { %1790 = vmatpush2.bf16.xpose.msra.mxu1 %v2571_v21  ;;  %2248 = vmatpush3.bf16.xpose.msra.mxu0 %v1481_v22 }
 0x1a4   :  { %1791 = vmatprep.subr.bf16.mxu1 %v2578_v12  ;;  %2270 = vmatprep.subr.msk.bf16.mxu0 %vm1419_vm0, %v2579_v24 }
 0x1ab   :  { %1792 = vmatpush2.bf16.xpose.msra.mxu1 %v2576_v26  ;;  %2250 = vmatpush3.bf16.xpose.msra.mxu0 %v1478_v28  ;;  %v2214_v26 = vld [vmem:[%s3451_s4] ss:$0 sm:$0xff] }
 0x1ac   :  { %1793 = vmatprep.subr.bf16.mxu1 %v2583_v18  ;;  %2271 = vmatprep.subr.msk.bf16.mxu0 %vm1419_vm0, %v2584_v30 }
 0x1b3   :  { %1794 = vmatpush2.bf16.xpose.msra.mxu1 %v2581_v33  ;;  %2252 = vmatpush3.bf16.xpose.msra.mxu0 %v1475_v34 }
 0x1b4   :  { %1795 = vmatprep.subr.bf16.mxu1 %v2588_v35  ;;  %2272 = vmatprep.subr.msk.bf16.mxu0 %vm1419_vm0, %v2589_v36 }
 0x1bb   :  { %1796 = vmatpush2.bf16.xpose.msra.mxu1 %v2586_v38  ;;  %2254 = vmatpush3.bf16.xpose.msra.mxu0 %v1472_v39 }
 0x1bc   :  { %1906 = vmatprep.subr.bf16.mxu0 %v2593_v29 }
 0x1c2   :  { %v1635_v41 = vpop.f32.mrf.mxu0  ;;  %1798 = vmatmul.mubr.bf16.vlgmr.msra.gmra.mxu1 %v3099_v31  ;;  %2256 = vmatmul.mubr.msk.bf16.vlgmr.msra.gmra.mxu0 %vm1419_vm0, %v2890_v17 }
 0x1c3   :  { %v1636_v42 = vadd.f32 %v1635_v41, %v3217_v19  ;;  %1907 = vmatpush1.bf16.xpose.msra.mxu0 %v2591_v40  ;;  %v2594_v19 = vld [vmem:[%s3450_s3 + $0xc] ss:$16 sps:$4 sm:$0x1f]  }
 0x1c4   :  { %v1637_v43 = vpop.f32.mrf.mxu0  ;;  %2219 = vmatprep.subr.msk.bf16.mxu1 %vm1885_vm1, %v2594_v19 }
 0x1c5   :  { %v1677_v44 = vadd.f32 %v3317_v60, %v1636_v42  ;;  %v1638_v45 = vadd.f32 %v1637_v43, %v3220_v23  ;;  %v2596_v23 = vld [vmem:[%s3450_s3 + $0x8] ss:$16 sps:$4 sm:$0x1f]  }
 0x1c6   :  { %v1639_v46 = vpop.f32.mrf.mxu0  ;;  %1947 = vmatpush1.bf16.xpose.msra.mxu1 %v2596_v23 }
 0x1c7   :  { %v1679_v47 = vadd.f32 %v3320_v61, %v1638_v45  ;;  %v1847_v48 = vmax.f32 %v1677_v44, 0.0 }
 0x1c8   :  { %v1640_v49 = vpop.f32.mrf.mxu0 }
 0x1c9   :  { %v1848_v50 = vmax.f32 %v1679_v47, 0.0  ;;  %v1851_v52 = vpack.c.bf16 %v1847_v48, %v1847_v48 }
 0x1cb   :  { %v1852_v51 = vpack.c.bf16 %v1848_v50, %v1848_v50 }
 0x1cd   :  { %1924 = vmatprep.mubr.bf16.mxu0 %v1852_v51 }
 0x1ce   :  { %1925 = vmatmul.mubr.bf16.vlgmr.msra.gmra.mxu0 %v1851_v52 }
 0x202   :  { %v1717_v31 = vpop.f32.mrf.mxu1 }
 0x203   :  { %v1718_v57 = vadd.f32 %v1717_v31, %v301_v56 }
 0x204   :  { %v1719_v17 = vpop.f32.mrf.mxu1 }
 0x205   :  { %v1720_v13 = vadd.f32 %v1719_v17, %v305_v0 }
 0x206   :  { %v1721_v53 = vpop.f32.mrf.mxu1 }
 0x208   :  { %v1722_v54 = vpop.f32.mrf.mxu1 }
 0x242   :  { %v1758_v58 = vpop.f32.mrf.mxu0 }
 0x243   :  { %v1759_v59 = vadd.f32 %v1758_v58, %v1718_v57 }
 0x244   :  { %v1760_v60 = vpop.f32.mrf.mxu0 }
 0x245   :  { %v1761_v4 = vadd.f32 %v1760_v60, %v1720_v13 }
 0x246   :  { %v1762_v61 = vpop.f32.mrf.mxu0 }
 0x248   :  { %v1763_v62 = vpop.f32.mrf.mxu0 }
 0x282   :  { %v1799_v1 = vpop.f32.mrf.mxu1  ;;  %v1840_v3 = vpop.f32.mrf.mxu0 }
 0x283   :  { %v1800_v5 = vadd.f32 %v1799_v1, %v1759_v59 }
 0x284   :  { %v1801_v6 = vpop.f32.mrf.mxu1  ;;  %v1842_v7 = vpop.f32.mrf.mxu0 }
 0x285   :  { %v1841_v8 = vadd.f32 %v1840_v3, %v1800_v5  ;;  %v1802_v9 = vadd.f32 %v1801_v6, %v1761_v4 }
 0x286   :  { %v1803_v10 = vpop.f32.mrf.mxu1  ;;  %v1844_v11 = vpop.f32.mrf.mxu0 }
 0x287   :  { %v1843_v14 = vadd.f32 %v1842_v7, %v1802_v9  ;;  %v1849_v15 = vmax.f32 %v1841_v8, 0.0 }
 0x288   :  { %v1804_v16 = vpop.f32.mrf.mxu1  ;;  %v1845_v20 = vpop.f32.mrf.mxu0 }
 0x289   :  { %v1850_v21 = vmax.f32 %v1843_v14, 0.0  ;;  %v1853_v63 = vpack.c.bf16 %v1849_v15, %v1849_v15 }
 0x28b   :  { %v1854_v22 = vpack.c.bf16 %v1850_v21, %v1850_v21 }
 0x28d   :  { %2220 = vmatprep.mubr.msk.bf16.mxu1 %vm1885_vm1, %v1854_v22 }
 0x28e   :  { %v1926_v2 = vpop.f32.mrf.mxu0  ;;  %1965 = vmatmul.mubr.bf16.vlgmr.msra.gmra.mxu1 %v1853_v63 }
 0x28f   :  { %v1927_v28 = vadd.f32 %v2214_v26, %v1926_v2 }
 0x290   :  { %v1928_v12 = vpop.f32.mrf.mxu0 }
 0x292   :  { %v1929_v24 = vpop.f32.mrf.mxu0 }
 0x294   :  { %v1930_v25 = vpop.f32.mrf.mxu0 }
 0x34e   :  { %v1966_v18 = vpop.f32.mrf.mxu1 }
 0x34f   :  { %v1967_v30 = vadd.f32 %v1966_v18, %v1927_v28 }
 0x350   :  { %v1968_v32 = vpop.f32.mrf.mxu1 }
 0x351   :  { %1973 = vst.msk [vmem:[#allocation2] sm:$0xff] %vm1972_vm2, %v1967_v30 }
 0x352   :  { %v1969_v33 = vpop.f32.mrf.mxu1 }
 0x353   :  { %2608 = shalt.err (!%p2605_p4)
}
 0x354   :  { %1983 = dma.vmem_to_hbm [thread:$0]  %s1981_s0, 128, %s3452_s5, [#allocation3]   ;;  %v1970_v34 = vpop.f32.mrf.mxu1 }
 0x355   :  { %2617 = dma.done.wait [#allocation3], 128  }
 0x356   :  { %2618 = vsyncadd [#allocation3], 4294967168 }
 0x357   :  { %1987 = vsyncpa [#allocation3], 1 }

</bundles_post_ra>
